<compile_context>
chip_gen: v5e
topology: v5e:2x2
jax: 0.10.0
libtpu: 0.0.40
codegen_flags: <defaults>
</compile_context>

<pallas_src>
import functools

import jax
import jax.numpy as jnp
from jax import lax
from jax.experimental import pallas as pl
from jax.experimental.pallas import tpu as pltpu


def _rnn_fc_kernel(x_ref,       # (t_tile, b_tile, I)    time-major x tile, mxu dtype
                   w_ih_ref,    # (I, H_pad)             mxu dtype
                   w_hh_ref,    # (H_pad, H_pad)         mxu dtype
                   b_ref,       # (1, H_pad)  f32, = b_ih + b_hh (zero-padded)
                   w_fc_ref,    # (H_pad, O_pad)         mxu dtype
                   b_fc_ref,    # (1, O_pad)  f32
                   out_ref,     # (b_tile, O_pad) f32
                   h_scratch,   # (b_tile, H_pad) f32, persists across time tiles
                   xw_scratch,  # (t_tile*b_tile, H_pad) f32
                   *, t_tile, b_tile, seq_len, compute_dtype, unroll):
    I = x_ref.shape[2]
    n = pl.program_id(1)                 # time-tile index (sequential axis)

    # h_0 = 0 at the first time tile of every batch block.
    @pl.when(n == 0)
    def _():
        h_scratch[...] = jnp.zeros_like(h_scratch)

    w_hh = w_hh_ref[...]

    # Fused input projection for the whole tile (off the serial h chain): one
    # MXU matmul with M = t_tile*b_tile.  Rows are time-major, so the per-step
    # slice below is contiguous and sublane-aligned (b_tile % 8 == 0).
    x2d = x_ref[...].reshape(t_tile * b_tile, I)
    xw_scratch[...] = (
        jnp.dot(x2d, w_ih_ref[...], preferred_element_type=jnp.float32)
        + b_ref[...])

    base = n * t_tile                    # global time offset of this tile
    mask_tail = (seq_len % t_tile) != 0  # trace-time: only mask if T is ragged

    def step(t, h):
        row = pl.multiple_of(t * b_tile, b_tile)
        xw_t = xw_scratch[pl.ds(row, b_tile), :]          # (b_tile, H_pad) f32
        rec = jnp.dot(h.astype(compute_dtype), w_hh,
                      preferred_element_type=jnp.float32)
        h_new = jnp.tanh(xw_t + rec)
        if mask_tail:
            # Steps past the true sequence length (zero-padded tail) keep h.
            h_new = jnp.where(base + t < seq_len, h_new, h)
        return h_new

    h = lax.fori_loop(0, t_tile, step, h_scratch[...], unroll=unroll)
    h_scratch[...] = h                                    # carry to next tile

    # fc on the final hidden state, written once at the last time tile.
    @pl.when(n == pl.num_programs(1) - 1)
    def _():
        out_ref[...] = (
            jnp.dot(h.astype(compute_dtype), w_fc_ref[...],
                    preferred_element_type=jnp.float32)
            + b_fc_ref[...]).astype(out_ref.dtype)


def _round_up(x, m):
    return (x + m - 1) // m * m


def _vmem_limit_bytes(t_tile, b_tile, I, H_pad, O_pad, mxu_dtype):
    """Scoped-VMEM budget: double-buffered x + resident weights + scratch."""
    w = jnp.dtype(mxu_dtype).itemsize
    x_blk = t_tile * b_tile * I * w
    weights = (I * H_pad + H_pad * H_pad + H_pad * O_pad) * w + (H_pad + O_pad) * 4
    scratch = (b_tile * H_pad + t_tile * b_tile * H_pad) * 4
    out_blk = b_tile * O_pad * 4
    need = 2 * x_blk + 2 * weights + scratch + 2 * out_blk
    # 2x headroom + 4 MiB compiler scratch; clamp under v7x's 64 MiB physical
    # VMEM and above v5e's 16 MiB default scoped limit.
    return int(min(max(2 * need + (4 << 20), 16 << 20), 48 << 20))


def time_interpretator_forward(x, params, *, t_tile=None, b_tile=8,
                               mxu_dtype=jnp.bfloat16, unroll=8):
    """x: (B, T, input_size) float32 (PyTorch batch_first layout)."""
    w_ih, w_hh, b_ih, b_hh, w_fc, b_fc = params
    B, T, I = x.shape
    H = w_hh.shape[0]
    O = w_fc.shape[0]

    assert b_tile % 8 == 0, "b_tile must be a multiple of 8 (sublane)"
    if t_tile is None:
        # Cap the streamed time tile so double-buffered x stays well inside
        # v7x's 64 MiB VMEM even for large I / b_tile.
        t_tile = min(128, _round_up(T, 8))

    # Lane/sublane padding: H, O -> multiples of 128 (lane-dense weights and an
    # unmasked output store), B -> multiple of b_tile, T -> multiple of t_tile
    # (padded steps are masked inside the kernel).
    # TODO(synk): for production H on v6e/v7x prefer multiples of 256 to fill
    # the 2x256x256 MXU per push (128 suffices on v5e).
    H_pad = _round_up(H, 128)
    O_pad = _round_up(O, 128)
    B_pad = _round_up(B, b_tile)
    T_pad = _round_up(T, t_tile)
    num_b = B_pad // b_tile
    num_t = T_pad // t_tile

    f32 = jnp.float32
    # Glue in plain JAX: transpose weights to row-major MXU layout, zero-pad,
    # fold the two RNN biases, cast MXU operands to the requested dtype.
    w_ih_p = jnp.zeros((I, H_pad), mxu_dtype).at[:, :H].set(w_ih.T.astype(mxu_dtype))
    w_hh_p = jnp.zeros((H_pad, H_pad), mxu_dtype).at[:H, :H].set(w_hh.T.astype(mxu_dtype))
    w_fc_p = jnp.zeros((H_pad, O_pad), mxu_dtype).at[:H, :O].set(w_fc.T.astype(mxu_dtype))
    b_p = jnp.zeros((1, H_pad), f32).at[0, :H].set((b_ih + b_hh).astype(f32))
    b_fc_p = jnp.zeros((1, O_pad), f32).at[0, :O].set(b_fc.astype(f32))

    # x: zero-pad batch & time, cast to the MXU dtype in HBM (halves the stream
    # for bf16), and go time-major so per-step xw slices are contiguous.
    x_p = jnp.zeros((T_pad, B_pad, I), mxu_dtype)
    x_p = x_p.at[:T, :B, :].set(jnp.transpose(x, (1, 0, 2)).astype(mxu_dtype))

    kernel = functools.partial(
        _rnn_fc_kernel, t_tile=t_tile, b_tile=b_tile, seq_len=T,
        compute_dtype=mxu_dtype, unroll=max(1, min(unroll, t_tile)))

    out = pl.pallas_call(
        kernel,
        out_shape=jax.ShapeDtypeStruct((B_pad, O_pad), f32),
        grid_spec=pltpu.PrefetchScalarGridSpec(
            num_scalar_prefetch=0,
            grid=(num_b, num_t),
            in_specs=[
                # x: streamed time tiles, double-buffered by the BlockSpec pipeline.
                pl.BlockSpec((t_tile, b_tile, I), lambda b, n: (n, b, 0)),
                # Weights / biases: constant index_map -> stay resident in VMEM.
                pl.BlockSpec((I, H_pad), lambda b, n: (0, 0)),
                pl.BlockSpec((H_pad, H_pad), lambda b, n: (0, 0)),
                pl.BlockSpec((1, H_pad), lambda b, n: (0, 0)),
                pl.BlockSpec((H_pad, O_pad), lambda b, n: (0, 0)),
                pl.BlockSpec((1, O_pad), lambda b, n: (0, 0)),
            ],
            out_specs=pl.BlockSpec((b_tile, O_pad), lambda b, n: (b, 0)),
            scratch_shapes=[
                pltpu.VMEM((b_tile, H_pad), f32),            # h carry
                pltpu.VMEM((t_tile * b_tile, H_pad), f32),   # per-tile xw
            ],
        ),
        compiler_params=pltpu.CompilerParams(
            # Batch rows are independent (shardable on v7x megacore); the time
            # axis carries the recurrence -> must stay sequential.
            dimension_semantics=("parallel", "arbitrary"),
            vmem_limit_bytes=_vmem_limit_bytes(t_tile, b_tile, I, H_pad, O_pad,
                                               mxu_dtype),
        ),
    )(x_p, w_ih_p, w_hh_p, b_p, w_fc_p, b_fc_p)
    return out[:B, :O]


def init_params(key, input_size, hidden_size, output_size):
    """Deterministic synthetic parameters matching nn.RNN / nn.Linear shapes."""
    H = hidden_size
    ks = jax.random.split(key, 6)
    scale = 1.0 / jnp.sqrt(jnp.float32(H))
    w_ih = jax.random.uniform(ks[0], (H, input_size), jnp.float32, -scale, scale)
    w_hh = jax.random.uniform(ks[1], (H, H), jnp.float32, -scale, scale)
    b_ih = jax.random.uniform(ks[2], (H,), jnp.float32, -scale, scale)
    b_hh = jax.random.uniform(ks[3], (H,), jnp.float32, -scale, scale)
    w_fc = jax.random.uniform(ks[4], (output_size, H), jnp.float32, -scale, scale)
    b_fc = jax.random.uniform(ks[5], (output_size,), jnp.float32, -scale, scale)
    return (w_ih, w_hh, b_ih, b_hh, w_fc, b_fc)


def reference_forward(x, params):
    """Pure-JAX reference of the PyTorch forward for sanity checking."""
    w_ih, w_hh, b_ih, b_hh, w_fc, b_fc = params
    B = x.shape[0]
    H = w_hh.shape[0]
    h = jnp.zeros((B, H), jnp.float32)

    def step(h, x_t):
        h_new = jnp.tanh(x_t @ w_ih.T + b_ih + h @ w_hh.T + b_hh)
        return h_new, None

    h_last, _ = lax.scan(step, h, jnp.transpose(x, (1, 0, 2)))
    return h_last @ w_fc.T + b_fc


if __name__ == "__main__":
    B, T = 2, 16
    input_size, hidden_size, output_size = 16, 32, 8

    key = jax.random.PRNGKey(0)
    k_x, k_p, k_x2 = jax.random.split(key, 3)
    x = jax.random.normal(k_x, (B, T, input_size), jnp.float32)
    params = init_params(k_p, input_size, hidden_size, output_size)

    ref = reference_forward(x, params)

    # f32 MXU path (tight check); t_tile=8 -> 2 time tiles, exercising the
    # persistent hidden-state scratch across grid steps.
    out_f32 = jax.block_until_ready(
        time_interpretator_forward(x, params, t_tile=8, mxu_dtype=jnp.float32))
    assert out_f32.shape == (B, output_size)
    assert jnp.allclose(out_f32, ref, atol=1e-4, rtol=1e-4)

    # Default path: bf16 MXU operands (v6e/v7x recommendation), f32
    # accumulation / bias / tanh -> small numeric drift vs. the f32 reference.
    out_bf16 = jax.block_until_ready(
        time_interpretator_forward(x, params, t_tile=8))
    assert out_bf16.shape == (B, output_size)
    assert jnp.allclose(out_bf16, ref, atol=1e-1, rtol=1e-1)

    # Ragged T (not a multiple of t_tile): exercises the masked trailing tile.
    T2 = 20
    x2 = jax.random.normal(k_x2, (B, T2, input_size), jnp.float32)
    ref2 = reference_forward(x2, params)
    out2 = jax.block_until_ready(
        time_interpretator_forward(x2, params, t_tile=8, mxu_dtype=jnp.float32))
    assert out2.shape == (B, output_size)
    assert jnp.allclose(out2, ref2, atol=1e-4, rtol=1e-4)

    print("KERNEL_OK")
</pallas_src>

<mosaic_0001>
module attributes {stable_mosaic.version = 11 : i64} {
  func.func @_rnn_fc_kernel(%arg0: i32, %arg1: i32, %arg2: memref<8x8x16xf32, #tpu.memory_space<vmem>>, %arg3: memref<16x128xf32, #tpu.memory_space<vmem>>, %arg4: memref<128x128xf32, #tpu.memory_space<vmem>>, %arg5: memref<1x128xf32, #tpu.memory_space<vmem>>, %arg6: memref<128x128xf32, #tpu.memory_space<vmem>>, %arg7: memref<1x128xf32, #tpu.memory_space<vmem>>, %arg8: memref<8x128xf32, #tpu.memory_space<vmem>>, %arg9: memref<8x128xf32, #tpu.memory_space<vmem>>, %arg10: memref<64x128xf32, #tpu.memory_space<vmem>>) attributes {dimension_semantics = [#tpu.dimension_semantics<parallel>, #tpu.dimension_semantics<arbitrary>], iteration_bounds = array<i64: 1, 2>, scalar_prefetch = 0 : i64, scratch_operands = 2 : i64, tpu.core_type = #tpu.core_type<tc>, window_params = [{transform_indices = @transform_0, window_bounds = array<i64: 8, 8, 16>}, {pipeline_mode = #tpu.pipeline_mode<synchronous>, transform_indices = @transform_1, window_bounds = array<i64: 16, 128>}, {pipeline_mode = #tpu.pipeline_mode<synchronous>, transform_indices = @transform_2, window_bounds = array<i64: 128, 128>}, {pipeline_mode = #tpu.pipeline_mode<synchronous>, transform_indices = @transform_3, window_bounds = array<i64: 1, 128>}, {pipeline_mode = #tpu.pipeline_mode<synchronous>, transform_indices = @transform_4, window_bounds = array<i64: 128, 128>}, {pipeline_mode = #tpu.pipeline_mode<synchronous>, transform_indices = @transform_5, window_bounds = array<i64: 1, 128>}, {transform_indices = @transform_6, window_bounds = array<i64: 8, 128>}]} {
    %c0_i32 = arith.constant 0 : i32
    %0 = arith.cmpi eq, %arg1, %c0_i32 : i32
    %1 = arith.extui %0 : i1 to i32
    %c0_i32_0 = arith.constant 0 : i32
    %2 = arith.cmpi ne, %1, %c0_i32_0 : i32
    scf.if %2 {
      %cst_42 = arith.constant 0.000000e+00 : f32
      %73 = vector.broadcast %cst_42 : f32 to vector<8x128xf32>
      %c0_43 = arith.constant 0 : index
      %c0_44 = arith.constant 0 : index
      %74 = vector.load %arg9[%c0_43, %c0_44] : memref<8x128xf32, #tpu.memory_space<vmem>>, vector<8x128xf32>
      tpu.vector_store %arg9[%c0_43, %c0_44], %73 {strides = array<i32>} : memref<8x128xf32, #tpu.memory_space<vmem>>, vector<8x128xf32>,
    } else {
    }
    %c0 = arith.constant 0 : index
    %c0_1 = arith.constant 0 : index
    %3 = vector.load %arg4[%c0, %c0_1] : memref<128x128xf32, #tpu.memory_space<vmem>>, vector<128x128xf32>
    %c0_2 = arith.constant 0 : index
    %c0_3 = arith.constant 0 : index
    %c0_4 = arith.constant 0 : index
    %4 = vector.load %arg2[%c0_2, %c0_3, %c0_4] : memref<8x8x16xf32, #tpu.memory_space<vmem>>, vector<8x8x16xf32>
    %5 = vector.shape_cast %4 : vector<8x8x16xf32> to vector<64x16xf32>
    %c0_5 = arith.constant 0 : index
    %c0_6 = arith.constant 0 : index
    %6 = vector.load %arg3[%c0_5, %c0_6] : memref<16x128xf32, #tpu.memory_space<vmem>>, vector<16x128xf32>
    %cst = arith.constant dense<0.000000e+00> : vector<64x128xf32>
    %7 = tpu.matmul %5, %6, %cst {dimension_numbers = #tpu.dot_dimension_numbers<[1], [0], [0], [1], [0, 0, 1, 1], [], []>} : vector<64x16xf32>, vector<16x128xf32>, vector<64x128xf32> -> vector<64x128xf32>
    %c0_7 = arith.constant 0 : index
    %c0_8 = arith.constant 0 : index
    %8 = vector.load %arg5[%c0_7, %c0_8] : memref<1x128xf32, #tpu.memory_space<vmem>>, vector<1x128xf32>
    %9 = vector.broadcast %8 : vector<1x128xf32> to vector<64x128xf32>
    %10 = arith.addf %7, %9 : vector<64x128xf32>
    %c0_9 = arith.constant 0 : index
    %c0_10 = arith.constant 0 : index
    %11 = vector.load %arg10[%c0_9, %c0_10] : memref<64x128xf32, #tpu.memory_space<vmem>>, vector<64x128xf32>
    tpu.vector_store %arg10[%c0_9, %c0_10], %10 {strides = array<i32>} : memref<64x128xf32, #tpu.memory_space<vmem>>, vector<64x128xf32>,
    %c0_11 = arith.constant 0 : index
    %c0_12 = arith.constant 0 : index
    %12 = vector.load %arg9[%c0_11, %c0_12] : memref<8x128xf32, #tpu.memory_space<vmem>>, vector<8x128xf32>
    %c0_i32_13 = arith.constant 0 : i32
    %c8_i32 = arith.constant 8 : i32
    %13 = arith.muli %c0_i32_13, %c8_i32 : i32
    %14 = tpu.assume_multiple %13, 8 : i32
    %15 = arith.index_cast %14 : i32 to index
    %c0_14 = arith.constant 0 : index
    %16 = vector.load %arg10[%15, %c0_14] : memref<64x128xf32, #tpu.memory_space<vmem>>, vector<8x128xf32>
    %cst_15 = arith.constant dense<0.000000e+00> : vector<8x128xf32>
    %17 = tpu.matmul %12, %3, %cst_15 {dimension_numbers = #tpu.dot_dimension_numbers<[1], [0], [0], [1], [0, 0, 1, 1], [], []>} : vector<8x128xf32>, vector<128x128xf32>, vector<8x128xf32> -> vector<8x128xf32>
    %18 = arith.addf %16, %17 : vector<8x128xf32>
    %19 = math.tanh %18 : vector<8x128xf32>
    %c1_i32 = arith.constant 1 : i32
    %c8_i32_16 = arith.constant 8 : i32
    %20 = arith.muli %c1_i32, %c8_i32_16 : i32
    %21 = tpu.assume_multiple %20, 8 : i32
    %22 = arith.index_cast %21 : i32 to index
    %c0_17 = arith.constant 0 : index
    %23 = vector.load %arg10[%22, %c0_17] : memref<64x128xf32, #tpu.memory_space<vmem>>, vector<8x128xf32>
    %cst_18 = arith.constant dense<0.000000e+00> : vector<8x128xf32>
    %24 = tpu.matmul %19, %3, %cst_18 {dimension_numbers = #tpu.dot_dimension_numbers<[1], [0], [0], [1], [0, 0, 1, 1], [], []>} : vector<8x128xf32>, vector<128x128xf32>, vector<8x128xf32> -> vector<8x128xf32>
    %25 = arith.addf %23, %24 : vector<8x128xf32>
    %26 = math.tanh %25 : vector<8x128xf32>
    %c2_i32 = arith.constant 2 : i32
    %c8_i32_19 = arith.constant 8 : i32
    %27 = arith.muli %c2_i32, %c8_i32_19 : i32
    %28 = tpu.assume_multiple %27, 8 : i32
    %29 = arith.index_cast %28 : i32 to index
    %c0_20 = arith.constant 0 : index
    %30 = vector.load %arg10[%29, %c0_20] : memref<64x128xf32, #tpu.memory_space<vmem>>, vector<8x128xf32>
    %cst_21 = arith.constant dense<0.000000e+00> : vector<8x128xf32>
    %31 = tpu.matmul %26, %3, %cst_21 {dimension_numbers = #tpu.dot_dimension_numbers<[1], [0], [0], [1], [0, 0, 1, 1], [], []>} : vector<8x128xf32>, vector<128x128xf32>, vector<8x128xf32> -> vector<8x128xf32>
    %32 = arith.addf %30, %31 : vector<8x128xf32>
    %33 = math.tanh %32 : vector<8x128xf32>
    %c3_i32 = arith.constant 3 : i32
    %c8_i32_22 = arith.constant 8 : i32
    %34 = arith.muli %c3_i32, %c8_i32_22 : i32
    %35 = tpu.assume_multiple %34, 8 : i32
    %36 = arith.index_cast %35 : i32 to index
    %c0_23 = arith.constant 0 : index
    %37 = vector.load %arg10[%36, %c0_23] : memref<64x128xf32, #tpu.memory_space<vmem>>, vector<8x128xf32>
    %cst_24 = arith.constant dense<0.000000e+00> : vector<8x128xf32>
    %38 = tpu.matmul %33, %3, %cst_24 {dimension_numbers = #tpu.dot_dimension_numbers<[1], [0], [0], [1], [0, 0, 1, 1], [], []>} : vector<8x128xf32>, vector<128x128xf32>, vector<8x128xf32> -> vector<8x128xf32>
    %39 = arith.addf %37, %38 : vector<8x128xf32>
    %40 = math.tanh %39 : vector<8x128xf32>
    %c4_i32 = arith.constant 4 : i32
    %c8_i32_25 = arith.constant 8 : i32
    %41 = arith.muli %c4_i32, %c8_i32_25 : i32
    %42 = tpu.assume_multiple %41, 8 : i32
    %43 = arith.index_cast %42 : i32 to index
    %c0_26 = arith.constant 0 : index
    %44 = vector.load %arg10[%43, %c0_26] : memref<64x128xf32, #tpu.memory_space<vmem>>, vector<8x128xf32>
    %cst_27 = arith.constant dense<0.000000e+00> : vector<8x128xf32>
    %45 = tpu.matmul %40, %3, %cst_27 {dimension_numbers = #tpu.dot_dimension_numbers<[1], [0], [0], [1], [0, 0, 1, 1], [], []>} : vector<8x128xf32>, vector<128x128xf32>, vector<8x128xf32> -> vector<8x128xf32>
    %46 = arith.addf %44, %45 : vector<8x128xf32>
    %47 = math.tanh %46 : vector<8x128xf32>
    %c5_i32 = arith.constant 5 : i32
    %c8_i32_28 = arith.constant 8 : i32
    %48 = arith.muli %c5_i32, %c8_i32_28 : i32
    %49 = tpu.assume_multiple %48, 8 : i32
    %50 = arith.index_cast %49 : i32 to index
    %c0_29 = arith.constant 0 : index
    %51 = vector.load %arg10[%50, %c0_29] : memref<64x128xf32, #tpu.memory_space<vmem>>, vector<8x128xf32>
    %cst_30 = arith.constant dense<0.000000e+00> : vector<8x128xf32>
    %52 = tpu.matmul %47, %3, %cst_30 {dimension_numbers = #tpu.dot_dimension_numbers<[1], [0], [0], [1], [0, 0, 1, 1], [], []>} : vector<8x128xf32>, vector<128x128xf32>, vector<8x128xf32> -> vector<8x128xf32>
    %53 = arith.addf %51, %52 : vector<8x128xf32>
    %54 = math.tanh %53 : vector<8x128xf32>
    %c6_i32 = arith.constant 6 : i32
    %c8_i32_31 = arith.constant 8 : i32
    %55 = arith.muli %c6_i32, %c8_i32_31 : i32
    %56 = tpu.assume_multiple %55, 8 : i32
    %57 = arith.index_cast %56 : i32 to index
    %c0_32 = arith.constant 0 : index
    %58 = vector.load %arg10[%57, %c0_32] : memref<64x128xf32, #tpu.memory_space<vmem>>, vector<8x128xf32>
    %cst_33 = arith.constant dense<0.000000e+00> : vector<8x128xf32>
    %59 = tpu.matmul %54, %3, %cst_33 {dimension_numbers = #tpu.dot_dimension_numbers<[1], [0], [0], [1], [0, 0, 1, 1], [], []>} : vector<8x128xf32>, vector<128x128xf32>, vector<8x128xf32> -> vector<8x128xf32>
    %60 = arith.addf %58, %59 : vector<8x128xf32>
    %61 = math.tanh %60 : vector<8x128xf32>
    %c7_i32 = arith.constant 7 : i32
    %c8_i32_34 = arith.constant 8 : i32
    %62 = arith.muli %c7_i32, %c8_i32_34 : i32
    %63 = tpu.assume_multiple %62, 8 : i32
    %64 = arith.index_cast %63 : i32 to index
    %c0_35 = arith.constant 0 : index
    %65 = vector.load %arg10[%64, %c0_35] : memref<64x128xf32, #tpu.memory_space<vmem>>, vector<8x128xf32>
    %cst_36 = arith.constant dense<0.000000e+00> : vector<8x128xf32>
    %66 = tpu.matmul %61, %3, %cst_36 {dimension_numbers = #tpu.dot_dimension_numbers<[1], [0], [0], [1], [0, 0, 1, 1], [], []>} : vector<8x128xf32>, vector<128x128xf32>, vector<8x128xf32> -> vector<8x128xf32>
    %67 = arith.addf %65, %66 : vector<8x128xf32>
    %68 = math.tanh %67 : vector<8x128xf32>
    %c8_i32_37 = arith.constant 8 : i32
    %c0_38 = arith.constant 0 : index
    %c0_39 = arith.constant 0 : index
    %69 = vector.load %arg9[%c0_38, %c0_39] : memref<8x128xf32, #tpu.memory_space<vmem>>, vector<8x128xf32>
    tpu.vector_store %arg9[%c0_38, %c0_39], %68 {strides = array<i32>} : memref<8x128xf32, #tpu.memory_space<vmem>>, vector<8x128xf32>,
    %c1_i32_40 = arith.constant 1 : i32
    %70 = arith.cmpi eq, %arg1, %c1_i32_40 : i32
    %71 = arith.extui %70 : i1 to i32
    %c0_i32_41 = arith.constant 0 : i32
    %72 = arith.cmpi ne, %71, %c0_i32_41 : i32
    scf.if %72 {
      %c0_42 = arith.constant 0 : index
      %c0_43 = arith.constant 0 : index
      %73 = vector.load %arg6[%c0_42, %c0_43] : memref<128x128xf32, #tpu.memory_space<vmem>>, vector<128x128xf32>
      %cst_44 = arith.constant dense<0.000000e+00> : vector<8x128xf32>
      %74 = tpu.matmul %68, %73, %cst_44 {dimension_numbers = #tpu.dot_dimension_numbers<[1], [0], [0], [1], [0, 0, 1, 1], [], []>} : vector<8x128xf32>, vector<128x128xf32>, vector<8x128xf32> -> vector<8x128xf32>
      %c0_45 = arith.constant 0 : index
      %c0_46 = arith.constant 0 : index
      %75 = vector.load %arg7[%c0_45, %c0_46] : memref<1x128xf32, #tpu.memory_space<vmem>>, vector<1x128xf32>
      %76 = vector.broadcast %75 : vector<1x128xf32> to vector<8x128xf32>
      %77 = arith.addf %74, %76 : vector<8x128xf32>
      %c0_47 = arith.constant 0 : index
      %c0_48 = arith.constant 0 : index
      %78 = vector.load %arg8[%c0_47, %c0_48] : memref<8x128xf32, #tpu.memory_space<vmem>>, vector<8x128xf32>
      tpu.vector_store %arg8[%c0_47, %c0_48], %77 {strides = array<i32>} : memref<8x128xf32, #tpu.memory_space<vmem>>, vector<8x128xf32>,
    } else {
    }
    return
  }
  func.func @transform_0(%arg0: i32, %arg1: i32) -> (i32, i32, i32) {
    %c0_i32 = arith.constant 0 : i32
    %c0_i32_0 = arith.constant 0 : i32
    return %arg1, %arg0, %c0_i32 : i32, i32, i32
  }
  func.func @transform_1(%arg0: i32, %arg1: i32) -> (i32, i32) {
    %c0_i32 = arith.constant 0 : i32
    %c0_i32_0 = arith.constant 0 : i32
    %c0_i32_1 = arith.constant 0 : i32
    return %c0_i32, %c0_i32_0 : i32, i32
  }
  func.func @transform_2(%arg0: i32, %arg1: i32) -> (i32, i32) {
    %c0_i32 = arith.constant 0 : i32
    %c0_i32_0 = arith.constant 0 : i32
    %c0_i32_1 = arith.constant 0 : i32
    return %c0_i32, %c0_i32_0 : i32, i32
  }
  func.func @transform_3(%arg0: i32, %arg1: i32) -> (i32, i32) {
    %c0_i32 = arith.constant 0 : i32
    %c0_i32_0 = arith.constant 0 : i32
    %c0_i32_1 = arith.constant 0 : i32
    return %c0_i32, %c0_i32_0 : i32, i32
  }
  func.func @transform_4(%arg0: i32, %arg1: i32) -> (i32, i32) {
    %c0_i32 = arith.constant 0 : i32
    %c0_i32_0 = arith.constant 0 : i32
    %c0_i32_1 = arith.constant 0 : i32
    return %c0_i32, %c0_i32_0 : i32, i32
  }
  func.func @transform_5(%arg0: i32, %arg1: i32) -> (i32, i32) {
    %c0_i32 = arith.constant 0 : i32
    %c0_i32_0 = arith.constant 0 : i32
    %c0_i32_1 = arith.constant 0 : i32
    return %c0_i32, %c0_i32_0 : i32, i32
  }
  func.func @transform_6(%arg0: i32, %arg1: i32) -> (i32, i32) {
    %c0_i32 = arith.constant 0 : i32
    %c0_i32_0 = arith.constant 0 : i32
    return %arg0, %c0_i32 : i32, i32
  }
}

</mosaic_0001>

<bundles_post_ra>
// kernel: tpu_custom_call.1
= control target key start
LH: loop header
LB: loop body
LE: loop exit
PB: predicated region body
PF: predicated region fallthrough
CT: control target
= control target key end

     0   :  { %s1519_s0 = inlined_call_operand.hbm [shape: f32[16,8,16], index: 0, kind: input, shape index: {}]   ;;  %s1520_s1 = inlined_call_operand.hbm [shape: f32[16,128], index: 1, kind: input, shape index: {}]   ;;  %s1521_s2 = inlined_call_operand.hbm [shape: f32[128,128], index: 2, kind: input, shape index: {}]   ;;  %s1522_s3 = inlined_call_operand.vmem [shape: f32[1,128], index: 3, kind: input, shape index: {}]   ;;  %s1523_s4 = inlined_call_operand.hbm [shape: f32[128,128], index: 4, kind: input, shape index: {}]   ;;  %s1524_s5 = inlined_call_operand.vmem [shape: f32[1,128], index: 5, kind: input, shape index: {}]   ;;  %s1525_s6 = inlined_call_operand.hbm [shape: f32[8,128], index: 6, kind: output, shape index: {}]  }
   0x1   :  { %1528 = sst [smem:[#allocation17_spill]] %s1520_s1 }
   0x2   :  { %11 = vsyncpa [#allocation5], 0 }
   0x3   :  { %13 = vsyncpa [#allocation5 + $0x1], 0 }
   0x4   :  { %14 = vsyncpa [#allocation8], 0 }
   0x5   :  { %15 = vsyncpa [#allocation11], 0 }
   0x6   :  { %16 = vsyncpa [#allocation6], 0  ;;  %s1178_s21 = smov 0   ;;  %s1180_s22 = smov 0  }
   0x7   :  { %s1182_s23 = smov 0   ;;  %s1184_s24 = smov 0  }
   0x8   :  { %s1186_s25 = smov 0   ;;  %s1188_s26 = smov 0  }
   0x9 LB: > { %s1526_s27 = sadd.s32 4294967295, %s1134_s26   ;;  %p56_p0 = scmp.ne.s32.totalorder %s1118_s22, %s1114_s21  ;;  %s1134_s26 = sphi %s1188_s26, %s22_s26   ;;  %s1130_s25 = sphi %s1186_s25, %s1541_s25   ;;  %s1126_s24 = sphi %s1184_s24, %s1540_s24   ;;  %s1122_s23 = sphi %s1182_s23, %s1539_s23   ;;  %s1118_s22 = sphi %s1180_s22, %s1538_s22   ;;  %s1114_s21 = sphi %s1178_s21, %s1537_s21  }
   0xa   : > { %p1210_p1 = scmp.eq.s32.totalorder %s1526_s27, 0  ;;  %p782_p2 = scmp.ge.s32.totalorder %s1134_s26, 1 }
   0xb   : > { %p198_p3 = scmp.lt.s32.totalorder %s1134_s26, 3  ;;  %s1531_s1 = sld [smem:[#allocation17_spill]] }
   0xc   : > { %p1218_p4 = por %p1210_p1, %p56_p0  ;;  %s1136_s10 = smov [#allocation7]  }
   0xd   : > { %p1225_p5 = pnand %p782_p2, %p198_p3  ;;  %s211_s11 = sshll.u32 %s1136_s10, 4  ;;  %s212_s11 = int_to_ptr.vmem [resolvable:$true] %s211_s11 }
   0xe   : > { %s223_s15 = sshll.u32 %s1521_s2, 4  ;;  %s1527_s16 = smov 128   ;;  %s224_s15 = int_to_ptr.hbm [resolvable:$true] %s223_s15 }
   0xf   : > { %p828_p6 = pneg %p1225_p5  ;;  %s1138_s17 = smov 8  }
  0x10   : > { %s1139_s18 = smov [#allocation9]   ;;  %s240_s30 = sshll.u32 %s1523_s4, 4  ;;  %s241_s30 = int_to_ptr.hbm [resolvable:$true] %s240_s30 }
  0x11   : > { %s209_s8 = sshll.u32 %s1531_s1, 4  ;;  %p1233_p7 = pnand %p828_p6, %p1210_p1  ;;  %s210_s8 = int_to_ptr.hbm [resolvable:$true] %s209_s8 }
  0x12   : > { %s225_s19 = sshll.u32 %s1139_s18, 4  ;;  %s1140_s7 = smov [#allocation10]   ;;  %s226_s19 = int_to_ptr.vmem [resolvable:$true] %s225_s19 }
  0x13   : > { %831 = dma.hbm_to_vmem [thread:$0]  (!%p1233_p7), %s210_s8, 256, %s212_s11, [#allocation8], %s1527_s16, %s1527_s16, %s1138_s17  }
  0x14   : > { %834 = dma.hbm_to_vmem [thread:$0]  (!%p1233_p7), %s224_s15, 2048, %s226_s19, [#allocation8], %s1527_s16, %s1527_s16, %s1138_s17  }
  0x15   : > { %s242_s8 = sshll.u32 %s1140_s7, 4  ;;  %s31_s10 = sadd.s32 1, %s1130_s25  ;;  %s243_s8 = int_to_ptr.vmem [resolvable:$true] %s242_s8 }
  0x16   : > { %837 = dma.hbm_to_vmem [thread:$0]  (!%p1233_p7), %s241_s30, 2048, %s243_s8, [#allocation11], %s1527_s16, %s1527_s16, %s1138_s17  }
  0x17   : > { %p32_p8 = scmp.ge.s32.totalorder %s31_s10, 2  ;;  %p50_p9 = scmp.ne.s32.totalorder %s1122_s23, %s1118_s22 }
  0x18   : > { %p51_p10 = scmp.eq.s32.totalorder %s1134_s26, 0  ;;  %s43_s11 = sadd.s32 1, %s1122_s23 }
  0x19   : > { %s1543_s10 = smov (%p32_p8, %s31_s10), 0  ;;  %s259_s15 = sand.u32 1, %s1122_s23  }
  0x1a   : > { %p1265_p11 = por %p51_p10, %p50_p9  ;;  %s38_s14 = ssub.s32 %s1130_s25, %s1543_s10 }
  0x1b   : > { %p41_p12 = scmp.eq.s32.totalorder %s38_s14, 0  ;;  %p845_p13 = scmp.lt.s32.totalorder %s1134_s26, 2 }
  0x1c   : > { %s787_s12 = sshll.u32 %s259_s15, 6  ;;  %s809_s18 = sshll.u32 %s1130_s25, 6 }
  0x1d   : > { %s1275_s19 = scalar_select %p41_p12, %s1122_s23, %s43_s11  }
  0x1e   : > { %s269_s30 = scalar_lea.hbm %s1519_s0, %s809_s18  ;;  %s263_s8 = scalar_lea.vmem [#allocation4], %s787_s12 }
  0x1f   : > { %s270_s7 = sshll.u32 %s269_s30, 4  ;;  %s272_s27 = sshll.u32 %s263_s8, 4  ;;  %s271_s7 = int_to_ptr.hbm [resolvable:$true] %s270_s7  ;;  %s273_s27 = int_to_ptr.vmem [resolvable:$true] %s272_s27 }
  0x20   : > { %p839_p0 = pnand %p845_p13, %p1265_p11  ;;  %s260_s16 = scalar_lea.sflag [#allocation5], %s259_s15 }
  0x21   : > { %s1535_s1 = smov 128   ;;  %284 = sbr.rel (%p1225_p5) target bundleno = 1356 (0x54c), region = 44 }
  0x22   : > { %841 = dma.hbm_to_vmem [thread:$0]  (!%p839_p0), %s271_s7, 1024, %s273_s27, %s260_s16, %s1535_s1, %s1535_s1, %s1138_s17  }
  0x23   : > { %s286_s11 = sand.u32 (!%p1225_p5), 1, %s1118_s22  }
  0x24   : > { %s791_s14 = sshll.u32 (!%p1225_p5), %s286_s11, 6  ;;  %s287_s18 = scalar_lea.sflag (!%p1225_p5), [#allocation5], %s286_s11 }
  0x25   : > { %s1288_s20 = scalar_lea.vmem (!%p1225_p5), [#allocation4], %s791_s14 }
  0x26   : > { %1097 = dma.done.wait (%p1218_p4), %s287_s18, 1024  }
  0x27   : > { %1099 = vsyncadd (%p1218_p4), %s287_s18, 4294966272 }
  0x28   : > { %1101 = dma.done.wait (%p1210_p1), [#allocation8], 2304  }
  0x29   : > { %1103 = vsyncadd (%p1210_p1), [#allocation8], 4294964992 }
  0x2a   : > { %1105 = dma.done.wait (%p1210_p1), [#allocation11], 2048  }
  0x2b   : > { %1107 = vsyncadd (%p1210_p1), [#allocation11], 4294965248  ;;  %p795_p2 = scmp.ne.s32.totalorder %s1126_s24, 0 }
  0x2d   : > { %334 = sbr.rel (%p795_p2) target bundleno = 52 (0x34), region = 64 }
  0x32   : > { %v1141_v0 = vmov 0.0  }
  0x33   : > { %335 = vst [vmem:[#allocation2] sm:$0xff] %v1141_v0 }
  0x34 PF: > { %v1303_v1 = vld [vmem:[#allocation9 + $0x78] sm:$0xff]  ;;  %v1305_v2 = vld [vmem:[#allocation9 + $0x70] sm:$0xff]  ;;  %v1309_v3 = vld [vmem:[#allocation9 + $0x68] sm:$0xff]  ;;  %vm366_vm0 = vcmask 130048   ;;  %p804_p1 = scmp.ne.s32.totalorder %s1126_s24, 1 }
  0x35   : > { %442 = vmatpush.msra.mxu1 %v1303_v1  ;;  %466 = vmatpush.msra.mxu2 %v1303_v1  ;;  %v1314_v4 = vld [vmem:[#allocation9 + $0x60] sm:$0xff]  ;;  %v361_v5 = vld [vmem:[#allocation7 + $0x8] sm:$0xff]  ;;  %v360_v6 = vld [vmem:[#allocation7] sm:$0xff] }
  0x36   : > { %490 = vmatpush.msra.mxu3 %v1303_v1  ;;  %405 = vmatpush.msra.mxu0 %v361_v5  ;;  %v352_v7 = vld [vmem:[%s1288_s20] sm:$0xff]  ;;  %v1319_v8 = vld [vmem:[#allocation9 + $0x58] sm:$0xff]  ;;  %v1330_v10 = vld [vmem:[#allocation9 + $0x48] sm:$0xff] }
  0x37   : > { %443 = vmatpush.msra.mxu1 %v1305_v2  ;;  %467 = vmatpush.msra.mxu2 %v1305_v2  ;;  %v1324_v9 = vld [vmem:[#allocation9 + $0x50] sm:$0xff]  ;;  %v1336_v11 = vld [vmem:[#allocation9 + $0x40] sm:$0xff]  ;;  %v1342_v12 = vld [vmem:[#allocation9 + $0x38] sm:$0xff] }
  0x38   : > { %491 = vmatpush.msra.mxu3 %v1305_v2  ;;  %406 = vmatpush.msra.mxu0 %v360_v6  ;;  %v1348_v13 = vld [vmem:[#allocation9 + $0x30] sm:$0xff]  ;;  %v1354_v14 = vld [vmem:[#allocation9 + $0x28] sm:$0xff]  ;;  %v1360_v15 = vld [vmem:[#allocation9 + $0x20] sm:$0xff] }
  0x39   : > { %444 = vmatpush.msra.mxu1 %v1309_v3  ;;  %468 = vmatpush.msra.mxu2 %v1309_v3  ;;  %v1366_v16 = vld [vmem:[#allocation9 + $0x18] sm:$0xff]  ;;  %v1372_v17 = vld [vmem:[#allocation9 + $0x10] sm:$0xff]  ;;  %v1378_v18 = vld [vmem:[#allocation9 + $0x8] sm:$0xff] }
  0x3a   : > { %492 = vmatpush.msra.mxu3 %v1309_v3  ;;  %796 = vmatmul.msk.f32.vlgmr.msra.gmra.mxu0 %vm366_vm0, %v352_v7  ;;  %v1384_v19 = vld [vmem:[#allocation9] sm:$0xff]  ;;  %v440_v20 = vld [vmem:[#allocation2] sm:$0xff]  ;;  %v353_v21 = vld [vmem:[%s1288_s20 + $0x8] sm:$0xff] }
  0x3b   : > { %445 = vmatpush.msra.mxu1 %v1314_v4  ;;  %469 = vmatpush.msra.mxu2 %v1314_v4  ;;  %v1470_v22 = vld [vmem:[%s1522_s3] ss:$0 sm:$0xff]  ;;  %v354_v28 = vld [vmem:[%s1288_s20 + $0x10] sm:$0xff]  ;;  %v356_v40 = vld [vmem:[%s1288_s20 + $0x20] sm:$0xff] }
  0x3c   : > { %493 = vmatpush.msra.mxu3 %v1314_v4  ;;  %586 = vmatpush.msrb.mxu0 %v1303_v1  ;;  %v355_v34 = vld [vmem:[%s1288_s20 + $0x18] sm:$0xff]  ;;  %v357_v46 = vld [vmem:[%s1288_s20 + $0x28] sm:$0xff]  ;;  %v358_v47 = vld [vmem:[%s1288_s20 + $0x30] sm:$0xff] }
  0x3d   : > { %446 = vmatpush.msra.mxu1 %v1319_v8  ;;  %470 = vmatpush.msra.mxu2 %v1319_v8  ;;  %v359_v53 = vld [vmem:[%s1288_s20 + $0x38] sm:$0xff] }
  0x3e   : > { %494 = vmatpush.msra.mxu3 %v1319_v8  ;;  %587 = vmatpush.msrb.mxu0 %v1305_v2 }
  0x3f   : > { %447 = vmatpush.msra.mxu1 %v1324_v9  ;;  %471 = vmatpush.msra.mxu2 %v1324_v9 }
  0x40   : > { %495 = vmatpush.msra.mxu3 %v1324_v9  ;;  %588 = vmatpush.msrb.mxu0 %v1309_v3 }
  0x41   : > { %448 = vmatpush.msra.mxu1 %v1330_v10  ;;  %472 = vmatpush.msra.mxu2 %v1330_v10 }
  0x42   : > { %496 = vmatpush.msra.mxu3 %v1330_v10  ;;  %589 = vmatpush.msrb.mxu0 %v1314_v4 }
  0x43   : > { %449 = vmatpush.msra.mxu1 %v1336_v11  ;;  %473 = vmatpush.msra.mxu2 %v1336_v11 }
  0x44   : > { %497 = vmatpush.msra.mxu3 %v1336_v11  ;;  %590 = vmatpush.msrb.mxu0 %v1319_v8 }
  0x45   : > { %450 = vmatpush.msra.mxu1 %v1342_v12  ;;  %474 = vmatpush.msra.mxu2 %v1342_v12 }
  0x46   : > { %498 = vmatpush.msra.mxu3 %v1342_v12  ;;  %591 = vmatpush.msrb.mxu0 %v1324_v9 }
  0x47   : > { %451 = vmatpush.msra.mxu1 %v1348_v13  ;;  %475 = vmatpush.msra.mxu2 %v1348_v13 }
  0x48   : > { %499 = vmatpush.msra.mxu3 %v1348_v13  ;;  %592 = vmatpush.msrb.mxu0 %v1330_v10 }
  0x49   : > { %452 = vmatpush.msra.mxu1 %v1354_v14  ;;  %476 = vmatpush.msra.mxu2 %v1354_v14 }
  0x4a   : > { %500 = vmatpush.msra.mxu3 %v1354_v14  ;;  %593 = vmatpush.msrb.mxu0 %v1336_v11 }
  0x4b   : > { %453 = vmatpush.msra.mxu1 %v1360_v15  ;;  %477 = vmatpush.msra.mxu2 %v1360_v15 }
  0x4c   : > { %501 = vmatpush.msra.mxu3 %v1360_v15  ;;  %594 = vmatpush.msrb.mxu0 %v1342_v12 }
  0x4d   : > { %454 = vmatpush.msra.mxu1 %v1366_v16  ;;  %478 = vmatpush.msra.mxu2 %v1366_v16 }
  0x4e   : > { %502 = vmatpush.msra.mxu3 %v1366_v16  ;;  %595 = vmatpush.msrb.mxu0 %v1348_v13 }
  0x4f   : > { %455 = vmatpush.msra.mxu1 %v1372_v17  ;;  %479 = vmatpush.msra.mxu2 %v1372_v17 }
  0x50   : > { %503 = vmatpush.msra.mxu3 %v1372_v17  ;;  %596 = vmatpush.msrb.mxu0 %v1354_v14 }
  0x51   : > { %456 = vmatpush.msra.mxu1 %v1378_v18  ;;  %480 = vmatpush.msra.mxu2 %v1378_v18 }
  0x52   : > { %504 = vmatpush.msra.mxu3 %v1378_v18  ;;  %597 = vmatpush.msrb.mxu0 %v1360_v15 }
  0x53   : > { %457 = vmatpush.msra.mxu1 %v1384_v19  ;;  %481 = vmatpush.msra.mxu2 %v1384_v19 }
  0x54   : > { %458 = vmatmul.f32.vlgmr.msra.gmra.mxu1 %v440_v20  ;;  %505 = vmatpush.msra.mxu3 %v1384_v19 }
  0x55   : > { %514 = vmatpush.msrb.mxu1 %v1303_v1  ;;  %538 = vmatpush.msrb.mxu2 %v1303_v1 }
  0x56   : > { %562 = vmatpush.msrb.mxu3 %v1303_v1  ;;  %598 = vmatpush.msrb.mxu0 %v1366_v16 }
  0x57   : > { %515 = vmatpush.msrb.mxu1 %v1305_v2  ;;  %539 = vmatpush.msrb.mxu2 %v1305_v2 }
  0x58   : > { %563 = vmatpush.msrb.mxu3 %v1305_v2  ;;  %599 = vmatpush.msrb.mxu0 %v1372_v17 }
  0x59   : > { %516 = vmatpush.msrb.mxu1 %v1309_v3  ;;  %540 = vmatpush.msrb.mxu2 %v1309_v3 }
  0x5a   : > { %564 = vmatpush.msrb.mxu3 %v1309_v3  ;;  %600 = vmatpush.msrb.mxu0 %v1378_v18 }
  0x5b   : > { %517 = vmatpush.msrb.mxu1 %v1314_v4  ;;  %541 = vmatpush.msrb.mxu2 %v1314_v4 }
  0x5c   : > { %565 = vmatpush.msrb.mxu3 %v1314_v4  ;;  %601 = vmatpush.msrb.mxu0 %v1384_v19 }
  0x5d   : > { %518 = vmatpush.msrb.mxu1 %v1319_v8  ;;  %542 = vmatpush.msrb.mxu2 %v1319_v8 }
  0x5e   : > { %566 = vmatpush.msrb.mxu3 %v1319_v8  ;;  %797 = vmatmul.msk.f32.gmra.mxu0 %vm366_vm0, %v353_v21 }
  0x5f   : > { %519 = vmatpush.msrb.mxu1 %v1324_v9  ;;  %543 = vmatpush.msrb.mxu2 %v1324_v9 }
  0x60   : > { %567 = vmatpush.msrb.mxu3 %v1324_v9 }
  0x61   : > { %520 = vmatpush.msrb.mxu1 %v1330_v10  ;;  %544 = vmatpush.msrb.mxu2 %v1330_v10 }
  0x62   : > { %568 = vmatpush.msrb.mxu3 %v1330_v10 }
  0x63   : > { %521 = vmatpush.msrb.mxu1 %v1336_v11  ;;  %545 = vmatpush.msrb.mxu2 %v1336_v11 }
  0x64   : > { %569 = vmatpush.msrb.mxu3 %v1336_v11 }
  0x65   : > { %522 = vmatpush.msrb.mxu1 %v1342_v12  ;;  %546 = vmatpush.msrb.mxu2 %v1342_v12 }
  0x66   : > { %570 = vmatpush.msrb.mxu3 %v1342_v12  ;;  %798 = vmatmul.msk.f32.gmra.mxu0 %vm366_vm0, %v354_v28 }
  0x67   : > { %523 = vmatpush.msrb.mxu1 %v1348_v13  ;;  %547 = vmatpush.msrb.mxu2 %v1348_v13 }
  0x68   : > { %571 = vmatpush.msrb.mxu3 %v1348_v13 }
  0x69   : > { %524 = vmatpush.msrb.mxu1 %v1354_v14  ;;  %548 = vmatpush.msrb.mxu2 %v1354_v14 }
  0x6a   : > { %572 = vmatpush.msrb.mxu3 %v1354_v14 }
  0x6b   : > { %525 = vmatpush.msrb.mxu1 %v1360_v15  ;;  %549 = vmatpush.msrb.mxu2 %v1360_v15 }
  0x6c   : > { %573 = vmatpush.msrb.mxu3 %v1360_v15 }
  0x6d   : > { %526 = vmatpush.msrb.mxu1 %v1366_v16  ;;  %550 = vmatpush.msrb.mxu2 %v1366_v16 }
  0x6e   : > { %574 = vmatpush.msrb.mxu3 %v1366_v16  ;;  %799 = vmatmul.msk.f32.gmra.mxu0 %vm366_vm0, %v355_v34 }
  0x6f   : > { %527 = vmatpush.msrb.mxu1 %v1372_v17  ;;  %551 = vmatpush.msrb.mxu2 %v1372_v17 }
  0x70   : > { %575 = vmatpush.msrb.mxu3 %v1372_v17 }
  0x71   : > { %528 = vmatpush.msrb.mxu1 %v1378_v18  ;;  %552 = vmatpush.msrb.mxu2 %v1378_v18 }
  0x72   : > { %576 = vmatpush.msrb.mxu3 %v1378_v18 }
  0x73   : > { %529 = vmatpush.msrb.mxu1 %v1384_v19  ;;  %553 = vmatpush.msrb.mxu2 %v1384_v19 }
  0x74   : > { %577 = vmatpush.msrb.mxu3 %v1384_v19 }
  0x75   : > { %610 = vmatpush.msra.mxu1 %v1303_v1 }
  0x76   : > { %800 = vmatmul.msk.f32.gmra.mxu0 %vm366_vm0, %v356_v40 }
  0x77   : > { %611 = vmatpush.msra.mxu1 %v1305_v2 }
  0x79   : > { %612 = vmatpush.msra.mxu1 %v1309_v3 }
  0x7b   : > { %613 = vmatpush.msra.mxu1 %v1314_v4 }
  0x7d   : > { %614 = vmatpush.msra.mxu1 %v1319_v8 }
  0x7e   : > { %801 = vmatmul.msk.f32.gmra.mxu0 %vm366_vm0, %v357_v46 }
  0x7f   : > { %615 = vmatpush.msra.mxu1 %v1324_v9 }
  0x81   : > { %616 = vmatpush.msra.mxu1 %v1330_v10 }
  0x83   : > { %617 = vmatpush.msra.mxu1 %v1336_v11 }
  0x85   : > { %618 = vmatpush.msra.mxu1 %v1342_v12 }
  0x86   : > { %802 = vmatmul.msk.f32.gmra.mxu0 %vm366_vm0, %v358_v47 }
  0x87   : > { %619 = vmatpush.msra.mxu1 %v1348_v13 }
  0x89   : > { %620 = vmatpush.msra.mxu1 %v1354_v14 }
  0x8b   : > { %621 = vmatpush.msra.mxu1 %v1360_v15 }
  0x8d   : > { %622 = vmatpush.msra.mxu1 %v1366_v16 }
  0x8e   : > { %803 = vmatmul.msk.f32.gmra.mxu0 %vm366_vm0, %v359_v53 }
  0x8f   : > { %623 = vmatpush.msra.mxu1 %v1372_v17 }
  0x91   : > { %624 = vmatpush.msra.mxu1 %v1378_v18 }
  0x93   : > { %625 = vmatpush.msra.mxu1 %v1384_v19 }
  0xb7   : > { %v408_v23 = vpop.f32.mrf.mxu0 }
  0xb8   : > { %v409_v24 = vadd.f32 %v1470_v22, %v408_v23 }
  0xd1   : > { %v459_v25 = vpop.f32.mrf.mxu1 }
  0xd2   : > { %v462_v26 = vadd.f32 %v459_v25, %v409_v24 }
  0xd4   : > { %907 = vtanh.f32 %v462_v26 }
  0xda   : > { %v908_v27 = vpop.eup %907 }
  0xdb   : > { %482 = vmatmul.f32.vlgmr.msra.gmra.mxu2 %v908_v27  ;;  %v411_v29 = vpop.f32.mrf.mxu0 }
  0xdc   : > { %v412_v30 = vadd.f32 %v1470_v22, %v411_v29 }
  0xe3   : > { %v414_v35 = vpop.f32.mrf.mxu0 }
  0xe4   : > { %v415_v36 = vadd.f32 %v1470_v22, %v414_v35 }
  0xeb   : > { %v417_v41 = vpop.f32.mrf.mxu0 }
  0xec   : > { %v418_v42 = vadd.f32 %v1470_v22, %v417_v41 }
  0xf3   : > { %v420_v48 = vpop.f32.mrf.mxu0 }
  0xf4   : > { %v421_v49 = vadd.f32 %v1470_v22, %v420_v48 }
  0xfb   : > { %v423_v54 = vpop.f32.mrf.mxu0 }
  0xfc   : > { %v424_v55 = vadd.f32 %v1470_v22, %v423_v54 }
 0x103   : > { %v426_v59 = vpop.f32.mrf.mxu0 }
 0x104   : > { %v427_v61 = vadd.f32 %v1470_v22, %v426_v59 }
 0x10b   : > { %v429_v60 = vpop.f32.mrf.mxu0 }
 0x10c   : > { %v430_v1 = vadd.f32 %v1470_v22, %v429_v60 }
 0x15e   : > { %v483_v31 = vpop.f32.mrf.mxu2 }
 0x15f   : > { %v486_v32 = vadd.f32 %v483_v31, %v412_v30 }
 0x161   : > { %909 = vtanh.f32 %v486_v32 }
 0x167   : > { %v910_v33 = vpop.eup %909 }
 0x168   : > { %506 = vmatmul.f32.vlgmr.msra.gmra.mxu3 %v910_v33 }
 0x1eb   : > { %v507_v37 = vpop.f32.mrf.mxu3 }
 0x1ec   : > { %v510_v38 = vadd.f32 %v507_v37, %v415_v36 }
 0x1ee   : > { %911 = vtanh.f32 %v510_v38 }
 0x1f4   : > { %v912_v39 = vpop.eup %911 }
 0x1f5   : > { %530 = vmatmul.f32.vlgmr.msrb.gmra.mxu1 %v912_v39 }
 0x272   : > { %v531_v43 = vpop.f32.mrf.mxu1 }
 0x273   : > { %v534_v44 = vadd.f32 %v531_v43, %v418_v42 }
 0x275   : > { %913 = vtanh.f32 %v534_v44 }
 0x27b   : > { %v914_v45 = vpop.eup %913 }
 0x27c   : > { %554 = vmatmul.f32.vlgmr.msrb.gmra.mxu2 %v914_v45 }
 0x2ff   : > { %v555_v50 = vpop.f32.mrf.mxu2 }
 0x300   : > { %v558_v51 = vadd.f32 %v555_v50, %v421_v49 }
 0x302   : > { %915 = vtanh.f32 %v558_v51 }
 0x308   : > { %v916_v52 = vpop.eup %915 }
 0x309   : > { %578 = vmatmul.f32.vlgmr.msrb.gmra.mxu3 %v916_v52 }
 0x38c   : > { %v579_v56 = vpop.f32.mrf.mxu3 }
 0x38d   : > { %v582_v57 = vadd.f32 %v579_v56, %v424_v55 }
 0x38f   : > { %917 = vtanh.f32 %v582_v57 }
 0x395   : > { %v918_v58 = vpop.eup %917 }
 0x396   : > { %602 = vmatmul.f32.vlgmr.msrb.gmra.mxu0 %v918_v58 }
 0x413   : > { %v603_v62 = vpop.f32.mrf.mxu0 }
 0x414   : > { %v606_v63 = vadd.f32 %v603_v62, %v427_v61 }
 0x416   : > { %919 = vtanh.f32 %v606_v63 }
 0x41c   : > { %v920_v0 = vpop.eup %919 }
 0x41d   : > { %626 = vmatmul.f32.vlgmr.msra.gmra.mxu1 %v920_v0 }
 0x49a   : > { %v627_v2 = vpop.f32.mrf.mxu1 }
 0x49b   : > { %v630_v3 = vadd.f32 %v627_v2, %v430_v1 }
 0x49d   : > { %921 = vtanh.f32 %v630_v3 }
 0x4a0   : > { %636 = sbr.rel (%p804_p1) target bundleno = 1350 (0x546), region = 68 }
 0x4a3   : > { %v922_v4 = vpop.eup %921 }
 0x4a4   : > { %632 = vst [vmem:[#allocation2] sm:$0xff] %v922_v4 }
 0x4a5   : > { %v652_v5 = vld [vmem:[#allocation10 + $0x78] sm:$0xff]  ;;  %v651_v6 = vld [vmem:[#allocation10 + $0x70] sm:$0xff]  ;;  %v650_v7 = vld [vmem:[#allocation10 + $0x68] sm:$0xff] }
 0x4a6   : > { %657 = vmatpush.msra.mxu0 %v652_v5  ;;  %v649_v8 = vld [vmem:[#allocation10 + $0x60] sm:$0xff]  ;;  %v648_v9 = vld [vmem:[#allocation10 + $0x58] sm:$0xff]  ;;  %v647_v10 = vld [vmem:[#allocation10 + $0x50] sm:$0xff] }
 0x4a7   : > { %v646_v11 = vld [vmem:[#allocation10 + $0x48] sm:$0xff]  ;;  %v645_v12 = vld [vmem:[#allocation10 + $0x40] sm:$0xff]  ;;  %v644_v13 = vld [vmem:[#allocation10 + $0x38] sm:$0xff] }
 0x4a8   : > { %658 = vmatpush.msra.mxu0 %v651_v6  ;;  %v643_v14 = vld [vmem:[#allocation10 + $0x30] sm:$0xff]  ;;  %v642_v15 = vld [vmem:[#allocation10 + $0x28] sm:$0xff]  ;;  %v641_v16 = vld [vmem:[#allocation10 + $0x20] sm:$0xff] }
 0x4a9   : > { %v640_v17 = vld [vmem:[#allocation10 + $0x18] sm:$0xff]  ;;  %v639_v18 = vld [vmem:[#allocation10 + $0x10] sm:$0xff]  ;;  %v638_v19 = vld [vmem:[#allocation10 + $0x8] sm:$0xff] }
 0x4aa   : > { %659 = vmatpush.msra.mxu0 %v650_v7  ;;  %v637_v20 = vld [vmem:[#allocation10] sm:$0xff]  ;;  %v923_v21 = vld [vmem:[%s1524_s5] ss:$0 sm:$0xff] }
 0x4ac   : > { %660 = vmatpush.msra.mxu0 %v649_v8 }
 0x4ae   : > { %661 = vmatpush.msra.mxu0 %v648_v9 }
 0x4b0   : > { %662 = vmatpush.msra.mxu0 %v647_v10 }
 0x4b2   : > { %663 = vmatpush.msra.mxu0 %v646_v11 }
 0x4b4   : > { %664 = vmatpush.msra.mxu0 %v645_v12 }
 0x4b6   : > { %665 = vmatpush.msra.mxu0 %v644_v13 }
 0x4b8   : > { %666 = vmatpush.msra.mxu0 %v643_v14 }
 0x4ba   : > { %667 = vmatpush.msra.mxu0 %v642_v15 }
 0x4bc   : > { %668 = vmatpush.msra.mxu0 %v641_v16 }
 0x4be   : > { %669 = vmatpush.msra.mxu0 %v640_v17 }
 0x4c0   : > { %670 = vmatpush.msra.mxu0 %v639_v18 }
 0x4c2   : > { %671 = vmatpush.msra.mxu0 %v638_v19 }
 0x4c4   : > { %672 = vmatpush.msra.mxu0 %v637_v20 }
 0x4c5   : > { %673 = vmatmul.f32.vlgmr.msra.gmra.mxu0 %v922_v4 }
 0x542   : > { %v674_v22 = vpop.f32.mrf.mxu0 }
 0x543   : > { %v675_v23 = vadd.f32 %v923_v21, %v674_v22 }
 0x545   : > { %677 = vst [vmem:[#allocation12] sm:$0xff] %v675_v23 }
 0x546 PF: > { %s1536_s29 = sadd.s32 4294967295, %s1134_s26   ;;  %s688_s17 = sshll.u32 %s1525_s6, 4  ;;  %s689_s17 = int_to_ptr.hbm [resolvable:$true] %s688_s17 }
 0x547   : > { %p849_p3 = scmp.eq.s32.totalorder %s1536_s29, 1  ;;  %s1142_s13 = smov [#allocation12]  }
 0x548   : > { %s686_s15 = sshll.u32 %s1142_s13, 4  ;;  %s687_s15 = int_to_ptr.vmem [resolvable:$true] %s686_s15 }
 0x549   : > { %825 = dma.vmem_to_hbm [thread:$0]  (%p849_p3), %s687_s15, 128, %s689_s17, [#allocation6]  }
 0x54a   : > { %1109 = dma.done.wait (%p849_p3), [#allocation6], 128  }
 0x54b   : > { %1111 = vsyncadd (%p849_p3), [#allocation6], 4294967168 }
 0x54c PF: > { %s22_s26 = sadd.s32 1, %s1134_s26   ;;  %s1537_s21 = smov %s1118_s22 }
 0x54d   : > { %p19_p4 = scmp.ge.s32.totalorder %s22_s26, 4   ;;  %s1538_s22 = smov %s1122_s23 }
 0x54e   : > { %s1539_s23 = smov %s1275_s19  ;;  %s1540_s24 = smov %s1130_s25 }
 0x54f   : > { %s1541_s25 = smov %s1543_s10  ;;  %21 = sbr.rel (!%p19_p4) target bundleno = 9 (0x9), region = 109 }
 0x554   :  { %702 = vsyncpa [#allocation5], 1 }
 0x555   :  { %704 = vsyncpa [#allocation5 + $0x1], 1 }
 0x556   :  { %705 = vsyncpa [#allocation8], 1 }
 0x557   :  { %706 = vsyncpa [#allocation11], 1 }
 0x558   :  { %707 = vsyncpa [#allocation6], 1 }
 0x559   :  { %709 = vsyncpa [#allocation6 + $0x1], 1 }

</bundles_post_ra>
